<compile_context>
chip_gen: v7x
topology: tpu7x:2x2x1
jax: 0.10.0
libtpu: 0.0.40
codegen_flags: <defaults>
</compile_context>

<pallas_src>
import functools
import math

import jax
import jax.numpy as jnp
from jax import lax
from jax.experimental import pallas as pl
from jax.experimental.pallas import tpu as pltpu


def _label_smoothing_kl_kernel(logp_ref, ign_ref, tgt_ref, loss_ref,
                               sum_acc, tgt_acc, *,
                               smoothing, confidence, c_base, c_smooth,
                               ignore_pos, ignore_index):
    """One (block_b, block_v) tile: accumulate rowsum(logp) and logp[target]; fold
    the label-smoothing constants per live row at the last vocab tile."""
    i = pl.program_id(1)            # batch-tile index within this split
    j = pl.program_id(2)            # vocab-tile index (reduction axis, last)
    nv = pl.num_programs(2)

    # loss_ref block index depends only on the split axis -> resident across (i, j).
    @pl.when((i == 0) & (j == 0))
    def _init_loss():
        loss_ref[...] = jnp.zeros_like(loss_ref)

    # Per-row accumulators reset at the start of every batch tile's vocab sweep.
    @pl.when(j == 0)
    def _init_acc():
        sum_acc[...] = jnp.zeros_like(sum_acc)
        tgt_acc[...] = jnp.zeros_like(tgt_acc)

    logp = logp_ref[...].astype(jnp.float32)        # (TB, TV) model log-probs
    tgt = tgt_ref[...]                              # (TB, 1) int32 target class ids
    tb, tv = logp.shape

    # Compile-time-constant local column iota; shift the target instead (cheap (TB,1) op).
    col = lax.broadcasted_iota(jnp.int32, (tb, tv), 1)
    tgt_local = tgt - j * tv                        # (TB, 1)
    tgt_sel = jnp.where(col == tgt_local, logp, jnp.float32(0.0))

    # ~3 VPU ops / element total: compare + select + adds folded into the row sums.
    sum_acc[...] = sum_acc[...] + jnp.sum(logp, axis=-1, keepdims=True)
    tgt_acc[...] = tgt_acc[...] + jnp.sum(tgt_sel, axis=-1, keepdims=True)

    @pl.when(j == nv - 1)
    def _finalize():
        rowsum = sum_acc[...]                                   # (TB, 1)
        tlogp = tgt_acc[...]                                    # (TB, 1) logp at target col
        ilogp = ign_ref[...].astype(jnp.float32)                # (TB, 1) logp at ignore col
        row_live = tgt != ignore_index                          # masked_fill_ of ignored rows
        tgt_is_ign = tgt == ignore_pos                          # scatter-after-zero edge case

        # Per live row with tgt != ignore_pos:
        #   sum_j p_j (log p_j - x_j) = c_conf + (V-2) c_smooth
        #                               - smoothing*rowsum
        #                               + (smoothing - confidence)*x_tgt
        #                               + smoothing*x_ign
        # Per live row with tgt == ignore_pos (V-1 smoothed cols, no separate ign col):
        #   ... = c_conf + (V-1) c_smooth - smoothing*rowsum + (smoothing - confidence)*x_tgt
        contrib = (jnp.float32(c_base)
                   - jnp.float32(smoothing) * rowsum
                   + jnp.float32(smoothing - confidence) * tlogp
                   + jnp.where(tgt_is_ign, jnp.float32(c_smooth),
                               jnp.float32(smoothing) * ilogp))
        contrib = jnp.where(row_live, contrib, jnp.float32(0.0))
        loss_ref[...] = loss_ref[...] + jnp.sum(contrib)


def _largest_divisor(n, base, cap):
    """Largest d such that d % base == 0, n % d == 0 and d <= cap (assumes n % base == 0)."""
    assert n % base == 0, (n, base)
    best = base
    d = base
    limit = min(n, max(cap, base))
    while d <= limit:
        if n % d == 0:
            best = d
        d += base
    return best


def _device_kind():
    try:
        return jax.devices()[0].device_kind.lower()
    except Exception:  # pragma: no cover - e.g. no devices during tracing on CPU
        return ""


def label_smoothing_loss(output, target, *, label_smoothing, tgt_vocab_size,
                         ignore_index=-100, block_b=None, block_v=None,
                         num_splits=None):
    """output: (B, V) log-probabilities (f32 or bf16); target: (B,) int class ids."""
    assert 0.0 < label_smoothing <= 1.0
    B, V = output.shape
    assert V == tgt_vocab_size
    assert V % 128 == 0, "vocab size must be a multiple of 128 (lane dim)"

    itemsize = jnp.dtype(output.dtype).itemsize
    sub_mult = 8 if itemsize >= 4 else (16 if itemsize == 2 else 32)
    assert B % sub_mult == 0, f"batch must be a multiple of {sub_mult} for dtype {output.dtype}"

    kind = _device_kind()
    multi_tc = any(t in kind for t in ("v7", "v4", "v5p"))   # >1 TensorCore per device
    is_v7 = "v7" in kind

    # Leading "parallel" axis only where there are 2 TensorCores to use it.
    if num_splits is None:
        num_splits = 2 if (multi_tc and B % (2 * sub_mult) == 0) else 1
    assert B % num_splits == 0
    rows_per_split = B // num_splits
    assert rows_per_split % sub_mult == 0

    # Tile sizing. Prefer block_v = V (one contiguous slab per DMA, no vocab grid axis);
    # only tile V when even a minimal-row full-width tile blows the per-buffer budget.
    # Budget: 4 MiB/buffer on v7x (64 MiB VMEM per TC, both cores live), 8 MiB on
    # v5e/v6e (128 MiB VMEM).
    per_buf_budget = (4 << 20) if is_v7 else (8 << 20)
    if block_v is None:
        if sub_mult * V * itemsize <= per_buf_budget:
            block_v = V
        else:
            block_v = _largest_divisor(V, 128, per_buf_budget // (sub_mult * itemsize))
    if block_b is None:
        cap_rows = max(sub_mult, per_buf_budget // (block_v * itemsize))
        cap_rows = min(cap_rows, 4096)           # bound the per-row scratch accumulators
        block_b = _largest_divisor(rows_per_split, sub_mult, cap_rows)
    assert rows_per_split % block_b == 0 and V % block_v == 0
    assert block_b % sub_mult == 0
    assert block_v % 128 == 0 or block_v == V

    nb = rows_per_split // block_b
    nv = V // block_v

    smoothing_value = float(label_smoothing) / (tgt_vocab_size - 2)
    confidence = 1.0 - float(label_smoothing)
    # Precomputed p*log(p) constants (guard the label_smoothing == 1 edge case: 0*log0 := 0).
    c_smooth = smoothing_value * math.log(smoothing_value) if smoothing_value > 0.0 else 0.0
    c_conf = confidence * math.log(confidence) if confidence > 0.0 else 0.0
    c_base = c_conf + (tgt_vocab_size - 2) * c_smooth
    # torch does one_hot[ignore_index] = 0 with python-style (possibly negative) indexing.
    ignore_pos = ignore_index % tgt_vocab_size

    tgt2d = target.astype(jnp.int32).reshape(B, 1)
    # Static column slice of the ignore column (tiny (B,1) side input; avoids any
    # per-element work for the one_hot[ignore_index] = 0 correction).
    ign_col = lax.slice_in_dim(output, ignore_pos, ignore_pos + 1, axis=1)

    kernel = functools.partial(
        _label_smoothing_kl_kernel,
        smoothing=smoothing_value,
        confidence=confidence,
        c_base=c_base,
        c_smooth=c_smooth,
        ignore_pos=ignore_pos,
        ignore_index=ignore_index,
    )

    # VMEM budget: double-buffered logp / ign / target tiles + per-row scratch + headroom.
    io_bytes = 2 * (block_b * block_v * itemsize + block_b * itemsize + block_b * 4)
    scratch_bytes = 2 * block_b * 128 * 4        # two (block_b,1) f32 accs, lane-padded
    vmem_limit = int(min(max(io_bytes + scratch_bytes + (4 << 20), 16 << 20), 96 << 20))

    partials = pl.pallas_call(
        kernel,
        out_shape=jax.ShapeDtypeStruct((num_splits, 1, 1), jnp.float32),
        grid_spec=pltpu.PrefetchScalarGridSpec(
            num_scalar_prefetch=0,
            grid=(num_splits, nb, nv),
            in_specs=[
                pl.BlockSpec((block_b, block_v), lambda c, i, j: (c * nb + i, j)),
                pl.BlockSpec((block_b, 1), lambda c, i, j: (c * nb + i, 0)),
                pl.BlockSpec((block_b, 1), lambda c, i, j: (c * nb + i, 0)),
            ],
            out_specs=pl.BlockSpec((1, 1, 1), lambda c, i, j: (c, 0, 0)),
            scratch_shapes=[
                pltpu.VMEM((block_b, 1), jnp.float32),   # rowsum(logp) accumulator
                pltpu.VMEM((block_b, 1), jnp.float32),   # logp[target] accumulator
            ],
        ),
        compiler_params=pltpu.CompilerParams(
            dimension_semantics=("parallel", "arbitrary", "arbitrary"),
            vmem_limit_bytes=vmem_limit,
        ),
    )(output, ign_col, tgt2d)

    return jnp.sum(partials)


def _reference(output, target, *, label_smoothing, tgt_vocab_size, ignore_index):
    """Pure-JAX mirror of the PyTorch forward, for correctness checking."""
    B, V = output.shape
    smoothing_value = label_smoothing / (tgt_vocab_size - 2)
    confidence = 1.0 - label_smoothing
    ignore_pos = ignore_index % tgt_vocab_size
    one_hot = jnp.full((V,), smoothing_value, jnp.float32).at[ignore_pos].set(0.0)
    p = jnp.tile(one_hot[None, :], (B, 1))
    p = p.at[jnp.arange(B), target].set(confidence)
    p = jnp.where((target == ignore_index)[:, None], 0.0, p)
    safe_p = jnp.where(p > 0, p, 1.0)
    return jnp.sum(jnp.where(p > 0, p * (jnp.log(safe_p) - output.astype(jnp.float32)), 0.0))


if __name__ == "__main__":
    LABEL_SMOOTHING = 0.1
    key = jax.random.PRNGKey(0)
    k1, k2, k3, k4, k5, k6 = jax.random.split(key, 6)

    # --- Test 1: auto tile sizing (block_v = V, single vocab tile), padding id = 0 ---
    B, V = 16, 256
    IGNORE_INDEX = 0
    output = jax.nn.log_softmax(jax.random.normal(k1, (B, V), dtype=jnp.float32), axis=-1)
    target = jax.random.randint(k2, (B,), 1, V, dtype=jnp.int32)
    target = target.at[0].set(IGNORE_INDEX).at[5].set(IGNORE_INDEX)   # some ignored rows

    loss = label_smoothing_loss(
        output, target,
        label_smoothing=LABEL_SMOOTHING, tgt_vocab_size=V, ignore_index=IGNORE_INDEX)
    loss = jax.block_until_ready(loss)
    ref = _reference(output, target, label_smoothing=LABEL_SMOOTHING,
                     tgt_vocab_size=V, ignore_index=IGNORE_INDEX)
    assert jnp.allclose(loss, ref, rtol=1e-5, atol=1e-5), (loss, ref)

    # --- Test 2: explicit small tiles to exercise vocab tiling + split axis + accumulation ---
    B2, V2 = 32, 512
    out2 = jax.nn.log_softmax(jax.random.normal(k3, (B2, V2), dtype=jnp.float32), axis=-1)
    tgt2 = jax.random.randint(k4, (B2,), 1, V2, dtype=jnp.int32)
    tgt2 = tgt2.at[3].set(IGNORE_INDEX).at[17].set(IGNORE_INDEX)

    loss2 = label_smoothing_loss(
        out2, tgt2,
        label_smoothing=LABEL_SMOOTHING, tgt_vocab_size=V2, ignore_index=IGNORE_INDEX,
        block_b=8, block_v=128, num_splits=2)
    loss2 = jax.block_until_ready(loss2)
    ref2 = _reference(out2, tgt2, label_smoothing=LABEL_SMOOTHING,
                      tgt_vocab_size=V2, ignore_index=IGNORE_INDEX)
    assert jnp.allclose(loss2, ref2, rtol=1e-5, atol=1e-5), (loss2, ref2)

    # --- Test 3: bf16 input, ignore_index=-100 (ignore_pos = V-100), and the live-row
    #     target == ignore_pos edge case (V-1 smoothed columns instead of V-2) ---
    B3, V3 = 32, 256
    IGN3 = -100                       # -> ignore_pos = 156; no target equals -100 (valid torch usage)
    out3 = jax.nn.log_softmax(jax.random.normal(k5, (B3, V3), dtype=jnp.float32),
                              axis=-1).astype(jnp.bfloat16)
    tgt3 = jax.random.randint(k6, (B3,), 0, V3, dtype=jnp.int32)
    tgt3 = tgt3.at[7].set((-100) % V3)                     # live row hitting the ignore column

    loss3 = label_smoothing_loss(
        out3, tgt3,
        label_smoothing=LABEL_SMOOTHING, tgt_vocab_size=V3, ignore_index=IGN3)
    loss3 = jax.block_until_ready(loss3)
    ref3 = _reference(out3, tgt3, label_smoothing=LABEL_SMOOTHING,
                      tgt_vocab_size=V3, ignore_index=IGN3)
    assert jnp.allclose(loss3, ref3, rtol=1e-4, atol=1e-4), (loss3, ref3)

    print("KERNEL_OK")
</pallas_src>

<mosaic_0001>
module attributes {stable_mosaic.version = 11 : i64} {
  func.func @_label_smoothing_kl_kernel(%arg0: i32, %arg1: i32, %arg2: i32, %arg3: memref<16x256xf32, #tpu.memory_space<vmem>>, %arg4: memref<16x1xf32, #tpu.memory_space<vmem>>, %arg5: memref<16x1xi32, #tpu.memory_space<vmem>>, %arg6: memref<1x1x1xf32, #tpu.memory_space<vmem>>, %arg7: memref<16x1xf32, #tpu.memory_space<vmem>>, %arg8: memref<16x1xf32, #tpu.memory_space<vmem>>) attributes {dimension_semantics = [#tpu.dimension_semantics<parallel>, #tpu.dimension_semantics<arbitrary>, #tpu.dimension_semantics<arbitrary>], iteration_bounds = array<i64: 1, 1, 1>, scalar_prefetch = 0 : i64, scratch_operands = 2 : i64, tpu.core_type = #tpu.core_type<tc>, window_params = [{transform_indices = @transform_0, window_bounds = array<i64: 16, 256>}, {transform_indices = @transform_1, window_bounds = array<i64: 16, 1>}, {transform_indices = @transform_2, window_bounds = array<i64: 16, 1>}, {transform_indices = @transform_3, window_bounds = array<i64: 1, 1, 1>}]} {
    %c0_i32 = arith.constant 0 : i32
    %0 = arith.cmpi eq, %arg1, %c0_i32 : i32
    %c0_i32_0 = arith.constant 0 : i32
    %1 = arith.cmpi eq, %arg2, %c0_i32_0 : i32
    %2 = arith.andi %0, %1 : i1
    %3 = arith.extui %2 : i1 to i32
    %c0_i32_1 = arith.constant 0 : i32
    %4 = arith.cmpi ne, %3, %c0_i32_1 : i32
    scf.if %4 {
      %cst_19 = arith.constant 0.000000e+00 : f32
      %31 = vector.broadcast %cst_19 : f32 to vector<1x1x1xf32>
      %c0_20 = arith.constant 0 : index
      %c0_21 = arith.constant 0 : index
      %c0_22 = arith.constant 0 : index
      %32 = vector.load %arg6[%c0_20, %c0_21, %c0_22] : memref<1x1x1xf32, #tpu.memory_space<vmem>>, vector<1x1x1xf32>
      tpu.vector_store %arg6[%c0_20, %c0_21, %c0_22], %31 {strides = array<i32>} : memref<1x1x1xf32, #tpu.memory_space<vmem>>, vector<1x1x1xf32>,
    } else {
    }
    %c0_i32_2 = arith.constant 0 : i32
    %5 = arith.cmpi eq, %arg2, %c0_i32_2 : i32
    %6 = arith.extui %5 : i1 to i32
    %c0_i32_3 = arith.constant 0 : i32
    %7 = arith.cmpi ne, %6, %c0_i32_3 : i32
    scf.if %7 {
      %cst_19 = arith.constant 0.000000e+00 : f32
      %31 = vector.broadcast %cst_19 : f32 to vector<16x1xf32>
      %c0_20 = arith.constant 0 : index
      %c0_21 = arith.constant 0 : index
      %32 = vector.load %arg7[%c0_20, %c0_21] : memref<16x1xf32, #tpu.memory_space<vmem>>, vector<16x1xf32>
      tpu.vector_store %arg7[%c0_20, %c0_21], %31 {strides = array<i32>} : memref<16x1xf32, #tpu.memory_space<vmem>>, vector<16x1xf32>,
      %cst_22 = arith.constant 0.000000e+00 : f32
      %33 = vector.broadcast %cst_22 : f32 to vector<16x1xf32>
      %c0_23 = arith.constant 0 : index
      %c0_24 = arith.constant 0 : index
      %34 = vector.load %arg8[%c0_23, %c0_24] : memref<16x1xf32, #tpu.memory_space<vmem>>, vector<16x1xf32>
      tpu.vector_store %arg8[%c0_23, %c0_24], %33 {strides = array<i32>} : memref<16x1xf32, #tpu.memory_space<vmem>>, vector<16x1xf32>,
    } else {
    }
    %c0 = arith.constant 0 : index
    %c0_4 = arith.constant 0 : index
    %8 = vector.load %arg3[%c0, %c0_4] : memref<16x256xf32, #tpu.memory_space<vmem>>, vector<16x256xf32>
    %c0_5 = arith.constant 0 : index
    %c0_6 = arith.constant 0 : index
    %9 = vector.load %arg5[%c0_5, %c0_6] : memref<16x1xi32, #tpu.memory_space<vmem>>, vector<16x1xi32>
    %10 = tpu.iota {dimensions = array<i32: 1>} : vector<16x256xi32>
    %c256_i32 = arith.constant 256 : i32
    %11 = arith.muli %arg2, %c256_i32 : i32
    %12 = vector.broadcast %11 : i32 to vector<16x1xi32>
    %13 = arith.subi %9, %12 : vector<16x1xi32>
    %14 = vector.broadcast %13 : vector<16x1xi32> to vector<16x256xi32>
    %15 = arith.cmpi eq, %10, %14 : vector<16x256xi32>
    %cst = arith.constant 0.000000e+00 : f32
    %16 = vector.broadcast %cst : f32 to vector<16x256xf32>
    %17 = arith.select %15, %8, %16 : vector<16x256xi1>, vector<16x256xf32>
    %c0_7 = arith.constant 0 : index
    %c0_8 = arith.constant 0 : index
    %18 = vector.load %arg7[%c0_7, %c0_8] : memref<16x1xf32, #tpu.memory_space<vmem>>, vector<16x1xf32>
    %cst_9 = arith.constant dense<0.000000e+00> : vector<16xf32>
    %19 = vector.multi_reduction <add>, %8, %cst_9 [1] : vector<16x256xf32> to vector<16xf32>
    %20 = vector.shape_cast %19 : vector<16xf32> to vector<16x1xf32>
    %21 = arith.addf %18, %20 : vector<16x1xf32>
    %c0_10 = arith.constant 0 : index
    %c0_11 = arith.constant 0 : index
    %22 = vector.load %arg7[%c0_10, %c0_11] : memref<16x1xf32, #tpu.memory_space<vmem>>, vector<16x1xf32>
    tpu.vector_store %arg7[%c0_10, %c0_11], %21 {strides = array<i32>} : memref<16x1xf32, #tpu.memory_space<vmem>>, vector<16x1xf32>,
    %c0_12 = arith.constant 0 : index
    %c0_13 = arith.constant 0 : index
    %23 = vector.load %arg8[%c0_12, %c0_13] : memref<16x1xf32, #tpu.memory_space<vmem>>, vector<16x1xf32>
    %cst_14 = arith.constant dense<0.000000e+00> : vector<16xf32>
    %24 = vector.multi_reduction <add>, %17, %cst_14 [1] : vector<16x256xf32> to vector<16xf32>
    %25 = vector.shape_cast %24 : vector<16xf32> to vector<16x1xf32>
    %26 = arith.addf %23, %25 : vector<16x1xf32>
    %c0_15 = arith.constant 0 : index
    %c0_16 = arith.constant 0 : index
    %27 = vector.load %arg8[%c0_15, %c0_16] : memref<16x1xf32, #tpu.memory_space<vmem>>, vector<16x1xf32>
    tpu.vector_store %arg8[%c0_15, %c0_16], %26 {strides = array<i32>} : memref<16x1xf32, #tpu.memory_space<vmem>>, vector<16x1xf32>,
    %c0_i32_17 = arith.constant 0 : i32
    %28 = arith.cmpi eq, %arg2, %c0_i32_17 : i32
    %29 = arith.extui %28 : i1 to i32
    %c0_i32_18 = arith.constant 0 : i32
    %30 = arith.cmpi ne, %29, %c0_i32_18 : i32
    scf.if %30 {
      %c0_19 = arith.constant 0 : index
      %c0_20 = arith.constant 0 : index
      %31 = vector.load %arg7[%c0_19, %c0_20] : memref<16x1xf32, #tpu.memory_space<vmem>>, vector<16x1xf32>
      %c0_21 = arith.constant 0 : index
      %c0_22 = arith.constant 0 : index
      %32 = vector.load %arg8[%c0_21, %c0_22] : memref<16x1xf32, #tpu.memory_space<vmem>>, vector<16x1xf32>
      %c0_23 = arith.constant 0 : index
      %c0_24 = arith.constant 0 : index
      %33 = vector.load %arg4[%c0_23, %c0_24] : memref<16x1xf32, #tpu.memory_space<vmem>>, vector<16x1xf32>
      %c0_i32_25 = arith.constant 0 : i32
      %34 = vector.broadcast %c0_i32_25 : i32 to vector<16x1xi32>
      %35 = arith.cmpi ne, %9, %34 : vector<16x1xi32>
      %c0_i32_26 = arith.constant 0 : i32
      %36 = vector.broadcast %c0_i32_26 : i32 to vector<16x1xi32>
      %37 = arith.cmpi eq, %9, %36 : vector<16x1xi32>
      %cst_27 = arith.constant 3.93700786E-4 : f32
      %38 = vector.broadcast %cst_27 : f32 to vector<16x1xf32>
      %39 = arith.mulf %38, %31 : vector<16x1xf32>
      %cst_28 = arith.constant -0.878816425 : f32
      %40 = vector.broadcast %cst_28 : f32 to vector<16x1xf32>
      %41 = arith.subf %40, %39 : vector<16x1xf32>
      %cst_29 = arith.constant -0.899606287 : f32
      %42 = vector.broadcast %cst_29 : f32 to vector<16x1xf32>
      %43 = arith.mulf %42, %32 : vector<16x1xf32>
      %44 = arith.addf %41, %43 : vector<16x1xf32>
      %cst_30 = arith.constant 3.93700786E-4 : f32
      %45 = vector.broadcast %cst_30 : f32 to vector<16x1xf32>
      %46 = arith.mulf %45, %33 : vector<16x1xf32>
      %cst_31 = arith.constant -0.00308658252 : f32
      %47 = vector.broadcast %cst_31 : f32 to vector<16x1xf32>
      %48 = arith.select %37, %47, %46 : vector<16x1xi1>, vector<16x1xf32>
      %49 = arith.addf %44, %48 : vector<16x1xf32>
      %cst_32 = arith.constant 0.000000e+00 : f32
      %50 = vector.broadcast %cst_32 : f32 to vector<16x1xf32>
      %51 = arith.select %35, %49, %50 : vector<16x1xi1>, vector<16x1xf32>
      %c0_33 = arith.constant 0 : index
      %c0_34 = arith.constant 0 : index
      %c0_35 = arith.constant 0 : index
      %52 = vector.load %arg6[%c0_33, %c0_34, %c0_35] : memref<1x1x1xf32, #tpu.memory_space<vmem>>, vector<1x1x1xf32>
      %53 = vector.shape_cast %51 : vector<16x1xf32> to vector<1x16x1xf32>
      %cst_36 = arith.constant dense<0.000000e+00> : vector<1xf32>
      %54 = vector.multi_reduction <add>, %53, %cst_36 [1, 2] : vector<1x16x1xf32> to vector<1xf32>
      %55 = vector.shape_cast %54 : vector<1xf32> to vector<1x1x1xf32>
      %56 = vector.extract %55[0, 0, 0] : f32 from vector<1x1x1xf32>
      %57 = vector.broadcast %56 : f32 to vector<1x1x1xf32>
      %58 = arith.addf %52, %57 : vector<1x1x1xf32>
      %c0_37 = arith.constant 0 : index
      %c0_38 = arith.constant 0 : index
      %c0_39 = arith.constant 0 : index
      %59 = vector.load %arg6[%c0_37, %c0_38, %c0_39] : memref<1x1x1xf32, #tpu.memory_space<vmem>>, vector<1x1x1xf32>
      tpu.vector_store %arg6[%c0_37, %c0_38, %c0_39], %58 {strides = array<i32>} : memref<1x1x1xf32, #tpu.memory_space<vmem>>, vector<1x1x1xf32>,
    } else {
    }
    return
  }
  func.func @transform_0(%arg0: i32, %arg1: i32, %arg2: i32) -> (i32, i32) {
    %c1_i32 = arith.constant 1 : i32
    %0 = arith.muli %arg0, %c1_i32 : i32
    %1 = arith.addi %0, %arg1 : i32
    %c0_i32 = arith.constant 0 : i32
    return %1, %arg2 : i32, i32
  }
  func.func @transform_1(%arg0: i32, %arg1: i32, %arg2: i32) -> (i32, i32) {
    %c1_i32 = arith.constant 1 : i32
    %0 = arith.muli %arg0, %c1_i32 : i32
    %1 = arith.addi %0, %arg1 : i32
    %c0_i32 = arith.constant 0 : i32
    %c0_i32_0 = arith.constant 0 : i32
    return %1, %c0_i32 : i32, i32
  }
  func.func @transform_2(%arg0: i32, %arg1: i32, %arg2: i32) -> (i32, i32) {
    %c1_i32 = arith.constant 1 : i32
    %0 = arith.muli %arg0, %c1_i32 : i32
    %1 = arith.addi %0, %arg1 : i32
    %c0_i32 = arith.constant 0 : i32
    %c0_i32_0 = arith.constant 0 : i32
    return %1, %c0_i32 : i32, i32
  }
  func.func @transform_3(%arg0: i32, %arg1: i32, %arg2: i32) -> (i32, i32, i32) {
    %c0_i32 = arith.constant 0 : i32
    %c0_i32_0 = arith.constant 0 : i32
    %c0_i32_1 = arith.constant 0 : i32
    return %arg0, %c0_i32, %c0_i32_0 : i32, i32, i32
  }
}

</mosaic_0001>

<bundles_post_ra>
// kernel: tpu_custom_call.1
= control target key start
LH: loop header
LB: loop body
LE: loop exit
PB: predicated region body
PF: predicated region fallthrough
CT: control target
= control target key end

     0   :  { %v260_v1 = vmov 0   ;;  %s346_s0 = inlined_call_operand.vmem [shape: f32[16,256], index: 0, kind: input, shape index: {}]   ;;  %s347_s1 = inlined_call_operand.vmem [shape: f32[16,1], index: 1, kind: input, shape index: {}]   ;;  %s348_s2 = inlined_call_operand.vmem [shape: s32[16,1], index: 2, kind: input, shape index: {}]   ;;  %s349_s3 = inlined_call_operand.hbm [shape: f32[1,1,1], index: 3, kind: output, shape index: {}]  }
   0x1   :  { %v286_v0 = vld [vmem:[%s348_s2] sm:$0xff]  ;;  %235 = vset.pattern.permute.xlu0 %v260_v1  ;;  %v292_v2 = vld [vmem:[%s348_s2 + $0x8] sm:$0xff]  ;;  %v102_v6 = vld [vmem:[%s346_s0 + $0x10] sm:$0xff] }
   0x2   :  { %114 = vperm.xlu0 %235, %v286_v0   ;;  %v100_v3 = vld [vmem:[%s346_s0] sm:$0xff]  ;;  %v101_v4 = vld [vmem:[%s346_s0 + $0x8] sm:$0xff]  ;;  %v103_v7 = vld [vmem:[%s346_s0 + $0x18] sm:$0xff] }
   0x3   :  { %v129_v5 = vadd.f32 %v101_v4, %v100_v3 }
   0x4   :  { %8 = vsyncpa [#allocation5], 0  ;;  %v132_v8 = vadd.f32 %v103_v7, %v102_v6  ;;  %vm95_vm0 = vcmask 7168   ;;  %v261_v9 = vmov 0.0   ;;  %v106_v10 = vlaneseq  ;;  %v159_v33 = vld [vmem:[%s347_s1] sm:$0xff]  ;;  %v160_v38 = vld [vmem:[%s347_s1 + $0x8] sm:$0xff] }
   0x5   :  { %130 = vadd.xlane.f32.xlu1 %v129_v5  ;;  %96 = vst.msk [vmem:[#allocation2] sm:$0xff] %vm95_vm0, %v261_v9  ;;  %97 = vst.msk [vmem:[#allocation2 + $0x8] sm:$0xff] %vm95_vm0, %v261_v9  ;;  %v173_v36 = vmul.f32 0.0003937008, %v159_v33  ;;  %vm163_vm5 = vcmp.eq.s32.totalorder %v286_v0, 0  ;;  %vm164_vm6 = vcmp.eq.s32.totalorder %v292_v2, 0 }
   0x6   :  { %117 = vperm.xlu0 %235, %v292_v2   ;;  %98 = vst.msk [vmem:[#allocation3] sm:$0xff] %vm95_vm0, %v261_v9  ;;  %99 = vst.msk [vmem:[#allocation3 + $0x8] sm:$0xff] %vm95_vm0, %v261_v9  ;;  %v107_v11 = vand.u32 127, %v106_v10  ;;  %v174_v44 = vmul.f32 0.0003937008, %v160_v38  ;;  %vm161_vm7 = vcmp.ne.s32.totalorder %v286_v0, 0 }
   0x7   :  { %v175_v43 = vsel %vm163_vm5, -0.0030865825, %v173_v36  ;;  %vm162_vm8 = vcmp.ne.s32.totalorder %v292_v2, 0  ;;  %vm90_vm9 = vcmask 0   ;;  %s262_s1 = smov [#allocation4]  }
   0x8   :  { %v108_v12 = vadd.s32 128, %v107_v11  ;;  %v176_v50 = vsel %vm164_vm6, -0.0030865825, %v174_v44  ;;  %91 = vst.msk [vmem:[#allocation4] sm:$0x1] %vm90_vm9, %v261_v9  ;;  %s204_s26 = sshll.u32 %s262_s1, 4  ;;  %s205_s26 = int_to_ptr.vmem [resolvable:$true] %s204_s26 }
   0x9   :  { %133 = vadd.xlane.f32.xlu1 %v132_v8  ;;  %s236_s28 = scalar_lea.vmem %s205_s26, 16  ;;  %s240_s29 = scalar_lea.vmem %s205_s26, 32 }
   0xa   :  { %p237_p0 = scmp.ne.s32.totalorder %s205_s26, %s236_s28  ;;  %p241_p1 = scmp.lt.s32.totalorder %s205_s26, %s205_s26 }
   0xb   :  { %p242_p2 = scmp.lt.s32.totalorder %s240_s29, %s236_s28 }
   0xc   :  { %v127_v21 = vld [vmem:[#allocation2] sm:$0xff]  ;;  %v128_v24 = vld [vmem:[#allocation2 + $0x8] sm:$0xff] }
   0xd   :  { %v140_v27 = vld [vmem:[#allocation3] sm:$0xff]  ;;  %v141_v30 = vld [vmem:[#allocation3 + $0x8] sm:$0xff]  ;;  %p243_p3 = por %p242_p2, %p241_p1 }
   0xf   :  { %v181_v1 = vld [vmem:[#allocation4] sm:$0x1]  ;;  %p244_p4 = pnand %p243_p3, %p237_p0 }
  0x81   :  { %v115_v13 = vpop.permute.xlu0 %114 }
  0x82   :  { %vm119_vm1 = vcmp.eq.s32.totalorder %v107_v11, %v115_v13  ;;  %vm120_vm2 = vcmp.eq.s32.totalorder %v108_v12, %v115_v13 }
  0x83   :  { %v124_v14 = vsel %vm120_vm2, %v101_v4, 0.0  ;;  %v123_v15 = vsel %vm119_vm1, %v100_v3, 0.0 }
  0x84   :  { %v142_v16 = vadd.f32 %v124_v14, %v123_v15 }
  0x85   :  { %v118_v17 = vpop.permute.xlu0 %117 }
  0x86   :  { %vm121_vm3 = vcmp.eq.s32.totalorder %v107_v11, %v118_v17  ;;  %vm122_vm4 = vcmp.eq.s32.totalorder %v108_v12, %v118_v17  ;;  %143 = vadd.xlane.f32.xlu0 %v142_v16 }
  0x87   :  { %v125_v18 = vsel %vm121_vm3, %v102_v6, 0.0  ;;  %v126_v19 = vsel %vm122_vm4, %v103_v7, 0.0 }
  0x88   :  { %v145_v20 = vadd.f32 %v126_v19, %v125_v18 }
  0x8a   :  { %146 = vadd.xlane.f32.xlu1 %v145_v20 }
  0x92   :  { %v131_v22 = vpop.xlane.xlu1 %130 }
  0x93   :  { %v135_v23 = vadd.f32 %v131_v22, %v127_v21 }
  0x95   :  { %138 = vst.msk [vmem:[#allocation2] sm:$0xff] %vm95_vm0, %v135_v23 }
  0x96   :  { %v134_v25 = vpop.xlane.xlu1 %133 }
  0x97   :  { %v136_v26 = vadd.f32 %v134_v25, %v128_v24 }
  0x99   :  { %139 = vst.msk [vmem:[#allocation2 + $0x8] sm:$0xff] %vm95_vm0, %v136_v26 }
  0x9c   :  { %v155_v32 = vld [vmem:[#allocation2] sm:$0xff] }
  0x9d   :  { %v165_v35 = vmul.f32 0.0003937008, %v155_v32 }
  0x9f   :  { %v167_v41 = vsub.f32 -0.8788164, %v165_v35 }
  0xa0   :  { %v156_v37 = vld [vmem:[#allocation2 + $0x8] sm:$0xff] }
  0xa1   :  { %v166_v40 = vmul.f32 0.0003937008, %v156_v37 }
  0xa3   :  { %v168_v47 = vsub.f32 -0.8788164, %v166_v40 }
 0x113   :  { %v144_v28 = vpop.xlane.xlu0 %143 }
 0x114   :  { %v148_v29 = vadd.f32 %v144_v28, %v140_v27 }
 0x116   :  { %150 = vst.msk [vmem:[#allocation3] sm:$0xff] %vm95_vm0, %v148_v29 }
 0x117   :  { %v147_v31 = vpop.xlane.xlu1 %146 }
 0x118   :  { %v149_v34 = vadd.f32 %v147_v31, %v141_v30 }
 0x11a   :  { %151 = vst.msk [vmem:[#allocation3 + $0x8] sm:$0xff] %vm95_vm0, %v149_v34 }
 0x11d   :  { %v157_v39 = vld [vmem:[#allocation3] sm:$0xff] }
 0x11e   :  { %v169_v42 = vmul.f32 -0.8996063, %v157_v39 }
 0x120   :  { %v171_v45 = vadd.f32 %v169_v42, %v167_v41 }
 0x121   :  { %v158_v46 = vld [vmem:[#allocation3 + $0x8] sm:$0xff] }
 0x122   :  { %v170_v48 = vmul.f32 -0.8996063, %v158_v46  ;;  %v177_v49 = vadd.f32 %v175_v43, %v171_v45 }
 0x124   :  { %v172_v51 = vadd.f32 %v170_v48, %v168_v47  ;;  %v179_v53 = vsel %vm161_vm7, %v177_v49, 0.0 }
 0x125   :  { %v182_v55 = vsel %vm95_vm0, %v179_v53, 0.0 }
 0x126   :  { %v178_v52 = vadd.f32 %v176_v50, %v172_v51 }
 0x128   :  { %v180_v54 = vsel %vm162_vm8, %v178_v52, 0.0 }
 0x129   :  { %v183_v56 = vsel %vm95_vm0, %v180_v54, 0.0 }
 0x12a   :  { %v184_v57 = vadd.f32 %v183_v56, %v182_v55 }
 0x12c   :  { %185 = vadd.xlane.f32.xlu1 %v184_v57 }
 0x1b9   :  { %v186_v58 = vpop.xlane.xlu1 %185 }
 0x1ba   :  { %v187_v59 = vrot.slane %v186_v58, 4 }
 0x1bc   :  { %v188_v60 = vadd.f32 %v187_v59, %v186_v58 }
 0x1be   :  { %v189_v61 = vrot.slane %v188_v60, 2 }
 0x1c0   :  { %v190_v62 = vadd.f32 %v189_v61, %v188_v60 }
 0x1c2   :  { %v191_v63 = vrot.slane %v190_v62, 1 }
 0x1c4   :  { %v192_v0 = vadd.f32 %v191_v63, %v190_v62 }
 0x1c6   :  { %230 = vpush %v192_v0 }
 0x1f7   :  { %s231_s27 = spop %230 }
 0x1f8   :  { %v194_v2 = vstv %s231_s27 }
 0x1f9   :  { %v195_v3 = vadd.f32 %v194_v2, %v181_v1 }
 0x1fb   :  { %197 = vst.msk [vmem:[#allocation4] sm:$0x1] %vm90_vm9, %v195_v3 }
 0x1fc   :  { %247 = shalt.err (!%p244_p4)
}
 0x1fd   :  { %s248_s5 = scalar_lea.hbm %s349_s3, 16 }
 0x1fe   :  { %p249_p5 = scmp.ne.s32.totalorder %s349_s3, %s248_s5  ;;  %p252_p6 = scmp.lt.u32.totalorder %s248_s5, %s349_s3 }
 0x200   :  { %p254_p7 = pnand %p252_p6, %p249_p5 }
 0x202   :  { %257 = shalt.err (!%p254_p7)
}
 0x203   :  { %207 = dma.vmem_to_hbm [thread:$0]  %s205_s26, 16, %s349_s3, [#allocation5]  }
 0x204   :  { %258 = dma.done.wait [#allocation5], 16  }
 0x205   :  { %259 = vsyncadd [#allocation5], 4294967280 }
 0x206   :  { %211 = vsyncpa [#allocation5], 1 }

</bundles_post_ra>
